<compile_context>
chip_gen: v6e
topology: v6e:2x2x1
jax: 0.10.0
libtpu: 0.0.40
codegen_flags: <defaults>
</compile_context>

<pallas_src>
import functools
import math

import jax
import jax.numpy as jnp
from jax.experimental import pallas as pl
from jax.experimental.pallas import tpu as pltpu


def _softmax_rows(scores_f32, keep_mask=None):
    """Numerically-stable row softmax of an f32 (Bb, tq, Lk) score tile."""
    m = jnp.max(scores_f32, axis=-1, keepdims=True)
    p = jnp.exp(scores_f32 - m)
    if keep_mask is not None:
        p = jnp.where(keep_mask, p, 0.0)           # exact zeros on masked keys
    denom = jnp.sum(p, axis=-1, keepdims=True)
    # Guard fully-masked rows (denom == 0) and keep the divide off the VALU:
    # EUP vrcp + one Newton refinement -> ~f32-exact, fully-masked rows -> 0.
    d = jnp.maximum(denom, jnp.float32(1e-30))
    r = pl.reciprocal(d, approx=True)
    r = r * (2.0 - d * r)
    return p * r


def _sdpa_kernel(q_ref, k_ref, v_ref, out_ref, attn_ref, *, scale):
    # Refs are (Bb, tq, D) / (Bb, Lk, D) / (Bb, Lk, Dv) tiles.
    # Operands stay in input dtype (bf16 => 2x MXU rate); accumulate in f32.
    s = jnp.einsum(
        "bqd,bkd->bqk", q_ref[...], k_ref[...], preferred_element_type=jnp.float32
    )
    s = s * jnp.float32(scale)
    attn = _softmax_rows(s)
    attn_ref[...] = attn.astype(attn_ref.dtype)
    out = jnp.einsum(
        "bqk,bkd->bqd",
        attn.astype(v_ref.dtype),
        v_ref[...],
        preferred_element_type=jnp.float32,
    )
    out_ref[...] = out.astype(out_ref.dtype)


def _sdpa_kernel_masked(q_ref, k_ref, v_ref, mask_ref, out_ref, attn_ref, *, scale):
    keep = mask_ref[...] != 0  # nonzero == keep (mask.logical_not() is filled)
    s = jnp.einsum(
        "bqd,bkd->bqk", q_ref[...], k_ref[...], preferred_element_type=jnp.float32
    )
    s = s * jnp.float32(scale)
    # Large finite negative instead of -inf so fully-masked rows stay NaN-free.
    s = jnp.where(keep, s, jnp.float32(-1e30))
    attn = _softmax_rows(s, keep_mask=keep)
    attn_ref[...] = attn.astype(attn_ref.dtype)
    out = jnp.einsum(
        "bqk,bkd->bqd",
        attn.astype(v_ref.dtype),
        v_ref[...],
        preferred_element_type=jnp.float32,
    )
    out_ref[...] = out.astype(out_ref.dtype)


def _pick_tq(Lq):
    """Lq tile: keep whole if small, else 256/128 rows per step (MXU-native)."""
    for cand in (256, 128):
        if Lq > cand and Lq % cand == 0:
            return cand
    return Lq


def _pick_bb(B, per_batch_bytes, budget_bytes=4 << 20):
    """Batch elements per grid step; keep 2x-buffered blocks well under scoped VMEM."""
    bb = 1
    for cand in range(1, B + 1):
        if B % cand == 0 and cand * per_batch_bytes <= budget_bytes:
            bb = cand
    return bb


def scaled_dot_product_attention(q, k, v, mask=None, dropout=0.0):
    """Pallas TPU implementation of ScaledDotProductAttention.forward.

    q: (B, Lq, D), k: (B, Lk, D), v: (B, Lk, Dv), mask: optional (B, Lq, Lk)
    Returns (output, attn) = ((B, Lq, Dv), (B, Lq, Lk)).
    `dropout` kept for API parity; identity at inference.
    """
    B, Lq, Dq = q.shape
    _, Lk, Dk = k.shape
    _, Lv, Dv = v.shape

    # NOTE: the original module compares q.size(1) vs v.size(1); the math requires
    # the key and value lengths to match, so we check Lk vs Lv (same message).
    if Lk != Lv:
        raise ValueError("The lengths of key and value do not match!")
    if Dq != Dk:
        raise ValueError("The sizes of query and key do not match!")

    scale = 1.0 / math.sqrt(Dk)
    out_dtype = q.dtype
    attn_dtype = q.dtype  # compute dtype (halves HBM writeback vs f32 when bf16)

    in_bytes = jnp.dtype(q.dtype).itemsize
    out_bytes = jnp.dtype(out_dtype).itemsize

    tq = _pick_tq(Lq)
    per_batch = (
        (tq * Dq + Lk * Dk + Lk * Dv) * in_bytes          # q/k/v tiles
        + (tq * Dv + tq * Lk) * out_bytes                  # out / attn tiles
        + tq * Lk * 4                                      # f32 scores live-set
        + (tq * Lk if mask is not None else 0)             # int8 mask tile
    )
    bb = _pick_bb(B, per_batch)

    grid = (B // bb, Lq // tq)

    q_spec = pl.BlockSpec((bb, tq, Dq), lambda b, i: (b, i, 0))
    k_spec = pl.BlockSpec((bb, Lk, Dk), lambda b, i: (b, 0, 0))
    v_spec = pl.BlockSpec((bb, Lk, Dv), lambda b, i: (b, 0, 0))
    o_spec = pl.BlockSpec((bb, tq, Dv), lambda b, i: (b, i, 0))
    a_spec = pl.BlockSpec((bb, tq, Lk), lambda b, i: (b, i, 0))

    out_shapes = (
        jax.ShapeDtypeStruct((B, Lq, Dv), out_dtype),
        jax.ShapeDtypeStruct((B, Lq, Lk), attn_dtype),
    )

    compiler_params = pltpu.CompilerParams(
        dimension_semantics=("parallel", "parallel")
    )

    if mask is None:
        kernel = functools.partial(_sdpa_kernel, scale=scale)
        return pl.pallas_call(
            kernel,
            out_shape=out_shapes,
            grid_spec=pltpu.PrefetchScalarGridSpec(
                num_scalar_prefetch=0,
                grid=grid,
                in_specs=[q_spec, k_spec, v_spec],
                out_specs=[o_spec, a_spec],
            ),
            compiler_params=compiler_params,
        )(q, k, v)
    else:
        kernel = functools.partial(_sdpa_kernel_masked, scale=scale)
        m_spec = pl.BlockSpec((bb, tq, Lk), lambda b, i: (b, i, 0))
        mask_i8 = mask.astype(jnp.int8)  # int8: 4x less HBM/VMEM than int32
        return pl.pallas_call(
            kernel,
            out_shape=out_shapes,
            grid_spec=pltpu.PrefetchScalarGridSpec(
                num_scalar_prefetch=0,
                grid=grid,
                in_specs=[q_spec, k_spec, v_spec, m_spec],
                out_specs=[o_spec, a_spec],
            ),
            compiler_params=compiler_params,
        )(q, k, v, mask_i8)


def _reference(q, k, v, mask=None):
    d_k = q.shape[-1]
    s = jnp.einsum("bqd,bkd->bqk", q, k) / math.sqrt(d_k)
    if mask is not None:
        s = jnp.where(mask, s, -1e30)
    attn = jax.nn.softmax(s, axis=-1)
    if mask is not None:
        attn = jnp.where(mask, attn, 0.0)
    out = jnp.einsum("bqk,bkd->bqd", attn, v)
    return out, attn


if __name__ == "__main__":
    key = jax.random.PRNGKey(0)
    kq, kk, kv = jax.random.split(key, 3)

    B, L, D, DV = 2, 8, 32, 32  # small shapes consistent with the module's usage
    q = jax.random.normal(kq, (B, L, D), dtype=jnp.float32)
    k = jax.random.normal(kk, (B, L, D), dtype=jnp.float32)
    v = jax.random.normal(kv, (B, L, DV), dtype=jnp.float32)

    # --- unmasked path ---
    out, attn = scaled_dot_product_attention(q, k, v, mask=None, dropout=0.1)
    jax.block_until_ready((out, attn))
    ref_out, ref_attn = _reference(q, k, v)
    assert out.shape == (B, L, DV) and attn.shape == (B, L, L)
    assert jnp.allclose(out, ref_out, atol=1e-4, rtol=1e-4)
    assert jnp.allclose(attn, ref_attn, atol=1e-4, rtol=1e-4)

    # --- masked path (incl. a fully-masked row: must be finite, all-zero) ---
    mask = jnp.ones((B, L, L), dtype=bool)
    mask = mask.at[:, :, L // 2 :].set(False)  # attend only to first half of keys
    mask = mask.at[0, 1, :].set(False)         # fully-masked query row
    out_m, attn_m = scaled_dot_product_attention(q, k, v, mask=mask, dropout=0.0)
    jax.block_until_ready((out_m, attn_m))
    ref_out_m, ref_attn_m = _reference(q, k, v, mask=mask)

    assert bool(jnp.all(jnp.isfinite(out_m))) and bool(jnp.all(jnp.isfinite(attn_m)))
    ok_rows = jnp.any(mask, axis=-1)[..., None]  # rows with >=1 allowed key
    assert jnp.allclose(
        jnp.where(ok_rows, attn_m, 0.0), jnp.where(ok_rows, ref_attn_m, 0.0),
        atol=1e-4, rtol=1e-4,
    )
    assert jnp.allclose(
        jnp.where(ok_rows, out_m, 0.0), jnp.where(ok_rows, ref_out_m, 0.0),
        atol=1e-4, rtol=1e-4,
    )
    assert jnp.allclose(attn_m[0, 1], jnp.zeros((L,)))  # fully-masked row -> zeros

    print("KERNEL_OK")
</pallas_src>

<mosaic_0001>
module attributes {stable_mosaic.version = 11 : i64} {
  func.func @_sdpa_kernel(%arg0: i32, %arg1: i32, %arg2: memref<2x8x32xf32, #tpu.memory_space<vmem>>, %arg3: memref<2x8x32xf32, #tpu.memory_space<vmem>>, %arg4: memref<2x8x32xf32, #tpu.memory_space<vmem>>, %arg5: memref<2x8x32xf32, #tpu.memory_space<vmem>>, %arg6: memref<2x8x8xf32, #tpu.memory_space<vmem>>) attributes {dimension_semantics = [#tpu.dimension_semantics<parallel>, #tpu.dimension_semantics<parallel>], iteration_bounds = array<i64: 1, 1>, scalar_prefetch = 0 : i64, scratch_operands = 0 : i64, tpu.core_type = #tpu.core_type<tc>, window_params = [{transform_indices = @transform_0, window_bounds = array<i64: 2, 8, 32>}, {transform_indices = @transform_1, window_bounds = array<i64: 2, 8, 32>}, {transform_indices = @transform_2, window_bounds = array<i64: 2, 8, 32>}, {transform_indices = @transform_3, window_bounds = array<i64: 2, 8, 32>}, {transform_indices = @transform_4, window_bounds = array<i64: 2, 8, 8>}]} {
    %c0 = arith.constant 0 : index
    %c0_0 = arith.constant 0 : index
    %c0_1 = arith.constant 0 : index
    %0 = vector.load %arg2[%c0, %c0_0, %c0_1] : memref<2x8x32xf32, #tpu.memory_space<vmem>>, vector<2x8x32xf32>
    %c0_2 = arith.constant 0 : index
    %c0_3 = arith.constant 0 : index
    %c0_4 = arith.constant 0 : index
    %1 = vector.load %arg3[%c0_2, %c0_3, %c0_4] : memref<2x8x32xf32, #tpu.memory_space<vmem>>, vector<2x8x32xf32>
    "tpu.trace_start"() <{level = 10 : i32, message = "bqd,bkd->bqk"}> : () -> ()
    %cst = arith.constant dense<0.000000e+00> : vector<2x8x8xf32>
    %2 = tpu.matmul %0, %1, %cst {dimension_numbers = #tpu.dot_dimension_numbers<[2], [2], [1], [1], [0, 0, 0, 1, 1, 1], [0], [0]>} : vector<2x8x32xf32>, vector<2x8x32xf32>, vector<2x8x8xf32> -> vector<2x8x8xf32>
    "tpu.trace_stop"() : () -> ()
    %cst_5 = arith.constant 0.176776692 : f32
    %3 = vector.broadcast %cst_5 : f32 to vector<2x8x8xf32>
    %4 = arith.mulf %2, %3 : vector<2x8x8xf32>
    %cst_6 = arith.constant dense<0xFF800000> : vector<2x8xf32>
    %5 = vector.multi_reduction <maximumf>, %4, %cst_6 [2] : vector<2x8x8xf32> to vector<2x8xf32>
    %6 = vector.shape_cast %5 : vector<2x8xf32> to vector<2x8x1xf32>
    %7 = vector.broadcast %6 : vector<2x8x1xf32> to vector<2x8x8xf32>
    %8 = arith.subf %4, %7 : vector<2x8x8xf32>
    %9 = math.exp %8 : vector<2x8x8xf32>
    %cst_7 = arith.constant dense<0.000000e+00> : vector<2x8xf32>
    %10 = vector.multi_reduction <add>, %9, %cst_7 [2] : vector<2x8x8xf32> to vector<2x8xf32>
    %11 = vector.shape_cast %10 : vector<2x8xf32> to vector<2x8x1xf32>
    %cst_8 = arith.constant 1.000000e-30 : f32
    %12 = vector.broadcast %cst_8 : f32 to vector<2x8x1xf32>
    %13 = arith.maximumf %11, %12 : vector<2x8x1xf32>
    %14 = tpu.reciprocal %13 {approx = true} : vector<2x8x1xf32> -> vector<2x8x1xf32>
    %15 = arith.mulf %13, %14 : vector<2x8x1xf32>
    %cst_9 = arith.constant 2.000000e+00 : f32
    %16 = vector.broadcast %cst_9 : f32 to vector<2x8x1xf32>
    %17 = arith.subf %16, %15 : vector<2x8x1xf32>
    %18 = arith.mulf %14, %17 : vector<2x8x1xf32>
    %19 = vector.broadcast %18 : vector<2x8x1xf32> to vector<2x8x8xf32>
    %20 = arith.mulf %9, %19 : vector<2x8x8xf32>
    %c0_10 = arith.constant 0 : index
    %c0_11 = arith.constant 0 : index
    %c0_12 = arith.constant 0 : index
    %21 = vector.load %arg6[%c0_10, %c0_11, %c0_12] : memref<2x8x8xf32, #tpu.memory_space<vmem>>, vector<2x8x8xf32>
    tpu.vector_store %arg6[%c0_10, %c0_11, %c0_12], %20 {strides = array<i32>} : memref<2x8x8xf32, #tpu.memory_space<vmem>>, vector<2x8x8xf32>,
    %c0_13 = arith.constant 0 : index
    %c0_14 = arith.constant 0 : index
    %c0_15 = arith.constant 0 : index
    %22 = vector.load %arg4[%c0_13, %c0_14, %c0_15] : memref<2x8x32xf32, #tpu.memory_space<vmem>>, vector<2x8x32xf32>
    "tpu.trace_start"() <{level = 10 : i32, message = "bqk,bkd->bqd"}> : () -> ()
    %cst_16 = arith.constant dense<0.000000e+00> : vector<2x8x32xf32>
    %23 = tpu.matmul %20, %22, %cst_16 {dimension_numbers = #tpu.dot_dimension_numbers<[2], [1], [1], [2], [0, 0, 0, 1, 1, 2], [0], [0]>} : vector<2x8x8xf32>, vector<2x8x32xf32>, vector<2x8x32xf32> -> vector<2x8x32xf32>
    "tpu.trace_stop"() : () -> ()
    %c0_17 = arith.constant 0 : index
    %c0_18 = arith.constant 0 : index
    %c0_19 = arith.constant 0 : index
    %24 = vector.load %arg5[%c0_17, %c0_18, %c0_19] : memref<2x8x32xf32, #tpu.memory_space<vmem>>, vector<2x8x32xf32>
    tpu.vector_store %arg5[%c0_17, %c0_18, %c0_19], %23 {strides = array<i32>} : memref<2x8x32xf32, #tpu.memory_space<vmem>>, vector<2x8x32xf32>,
    return
  }
  func.func @transform_0(%arg0: i32, %arg1: i32) -> (i32, i32, i32) {
    %c0_i32 = arith.constant 0 : i32
    %c0_i32_0 = arith.constant 0 : i32
    return %arg0, %arg1, %c0_i32 : i32, i32, i32
  }
  func.func @transform_1(%arg0: i32, %arg1: i32) -> (i32, i32, i32) {
    %c0_i32 = arith.constant 0 : i32
    %c0_i32_0 = arith.constant 0 : i32
    %c0_i32_1 = arith.constant 0 : i32
    return %arg0, %c0_i32, %c0_i32_0 : i32, i32, i32
  }
  func.func @transform_2(%arg0: i32, %arg1: i32) -> (i32, i32, i32) {
    %c0_i32 = arith.constant 0 : i32
    %c0_i32_0 = arith.constant 0 : i32
    %c0_i32_1 = arith.constant 0 : i32
    return %arg0, %c0_i32, %c0_i32_0 : i32, i32, i32
  }
  func.func @transform_3(%arg0: i32, %arg1: i32) -> (i32, i32, i32) {
    %c0_i32 = arith.constant 0 : i32
    %c0_i32_0 = arith.constant 0 : i32
    return %arg0, %arg1, %c0_i32 : i32, i32, i32
  }
  func.func @transform_4(%arg0: i32, %arg1: i32) -> (i32, i32, i32) {
    %c0_i32 = arith.constant 0 : i32
    %c0_i32_0 = arith.constant 0 : i32
    return %arg0, %arg1, %c0_i32 : i32, i32, i32
  }
}

</mosaic_0001>

<bundles_post_ra>
// kernel: tpu_custom_call.1
= control target key start
LH: loop header
LB: loop body
LE: loop exit
PB: predicated region body
PF: predicated region fallthrough
CT: control target
= control target key end

     0   :  { %10 = vsyncpa [#allocation3], 0  ;;  %s672_s0 = inlined_call_operand.hbm [shape: f32[2,8,32], index: 0, kind: input, shape index: {}]   ;;  %s673_s1 = inlined_call_operand.hbm [shape: f32[2,8,32], index: 1, kind: input, shape index: {}]   ;;  %s674_s2 = inlined_call_operand.hbm [shape: f32[2,8,32], index: 2, kind: input, shape index: {}]   ;;  %s675_s3 = inlined_call_operand.hbm [shape: f32[2,8,32], index: 3, kind: output, shape index: {0}]   ;;  %s676_s4 = inlined_call_operand.hbm [shape: f32[2,8,8], index: 4, kind: output, shape index: {1}]  }
   0x1   :  { %11 = vsyncpa [#allocation6], 0 }
   0x2   :  { %12 = vsyncpa [#allocation4], 0 }
   0x3   :  { %13 = vsyncpa [#allocation10], 0  ;;  %s594_s15 = smov [#allocation5]   ;;  %s595_s17 = smov [#allocation2]  }
   0x4   :  { %s31_s16 = sshll.u32 %s594_s15, 4  ;;  %s19_s18 = sshll.u32 %s595_s17, 4  ;;  %s32_s16 = int_to_ptr.vmem [resolvable:$true] %s31_s16  ;;  %s20_s18 = int_to_ptr.vmem [resolvable:$true] %s19_s18 }
   0x5   :  { %s494_s19 = scalar_lea.vmem %s32_s16, 256  ;;  %p499_p1 = scmp.lt.s32.totalorder %s32_s16, %s32_s16 }
   0x6   :  { %p495_p0 = scmp.ne.s32.totalorder %s32_s16, %s494_s19  ;;  %p500_p2 = scmp.lt.s32.totalorder %s494_s19, %s494_s19 }
   0x8   :  { %p501_p3 = por %p500_p2, %p499_p1 }
   0xa   :  { %p502_p4 = pnand %p501_p3, %p495_p0 }
   0xc   :  { %505 = shalt.err (!%p502_p4)
}
   0xd   :  { %s596_s20 = smov 128   ;;  %s597_s21 = smov 8  }
   0xe   :  { %37 = dma.hbm_to_vmem [thread:$0]  %s673_s1, 256, %s32_s16, [#allocation6], %s596_s20, %s596_s20, %s597_s21  }
   0xf   :  { %s514_s24 = scalar_lea.vmem %s20_s18, 256  ;;  %p519_p6 = scmp.lt.s32.totalorder %s20_s18, %s20_s18 }
  0x10   :  { %p515_p5 = scmp.ne.s32.totalorder %s20_s18, %s514_s24  ;;  %p520_p7 = scmp.lt.s32.totalorder %s514_s24, %s514_s24 }
  0x12   :  { %p521_p8 = por %p520_p7, %p519_p6 }
  0x14   :  { %p522_p9 = pnand %p521_p8, %p515_p5 }
  0x16   :  { %525 = shalt.err (!%p522_p9)
}
  0x17   :  { %25 = dma.hbm_to_vmem [thread:$0]  %s672_s0, 256, %s20_s18, [#allocation3], %s596_s20, %s596_s20, %s597_s21  }
  0x18   :  { %s598_s27 = smov [#allocation7]  }
  0x19   :  { %s43_s28 = sshll.u32 %s598_s27, 4  ;;  %s44_s28 = int_to_ptr.vmem [resolvable:$true] %s43_s28 }
  0x1a   :  { %s534_s29 = scalar_lea.vmem %s44_s28, 256  ;;  %p539_p11 = scmp.lt.s32.totalorder %s44_s28, %s44_s28 }
  0x1b   :  { %p535_p10 = scmp.ne.s32.totalorder %s44_s28, %s534_s29  ;;  %p540_p12 = scmp.lt.s32.totalorder %s534_s29, %s534_s29 }
  0x1d   :  { %p541_p13 = por %p540_p12, %p539_p11 }
  0x1f   :  { %p542_p0 = pnand %p541_p13, %p535_p10 }
  0x21   :  { %545 = shalt.err (!%p542_p0)
}
  0x22   :  { %49 = dma.hbm_to_vmem [thread:$0]  %s674_s2, 256, %s44_s28, [#allocation6], %s596_s20, %s596_s20, %s597_s21  }
  0x23   :  { %586 = dma.done.wait [#allocation3], 256  }
  0x24   :  { %587 = vsyncadd [#allocation3], 4294967040 }
  0x25   :  { %588 = dma.done.wait [#allocation6], 512  }
  0x26   :  { %589 = vsyncadd [#allocation6], 4294966784  ;;  %v599_v0 = vmov 0.0   ;;  %vm600_vm0 = vmmov 0   ;;  %vm63_vm1 = vcmask 261120   ;;  %v61_v1 = vld [vmem:[#allocation5] sm:$0xff] }
  0x27   :  { %449 = vmatprep.subr.mxu0 %v599_v0  ;;  %454 = vmatprep.subr.mxu1 %v599_v0  ;;  %v62_v2 = vld [vmem:[#allocation5 + $0x8] sm:$0xff]  ;;  %v59_v3 = vld [vmem:[#allocation2] sm:$0xff]  ;;  %v60_v4 = vld [vmem:[#allocation2 + $0x8] sm:$0xff]  ;;  %vm218_vm2 = vcmask 64512   ;;  %s601_s0 = smov [#allocation9]  }
  0x28   :  { %451 = vmatprep.mubr.msk.f32.mxu0 %vm600_vm0, %v599_v0  ;;  %456 = vmatprep.mubr.msk.f32.mxu1 %vm600_vm0, %v599_v0  ;;  %v251_v23 = vld [vmem:[#allocation7] sm:$0xff]  ;;  %v252_v24 = vld [vmem:[#allocation7 + $0x8] sm:$0xff]  ;;  %s418_s2 = sshll.u32 %s601_s0, 4  ;;  %s419_s2 = int_to_ptr.vmem [resolvable:$true] %s418_s2 }
  0x29   :  { %450 = vmatpush3.xpose.msk.msra.mxu0 %vm63_vm1, %v61_v1  ;;  %455 = vmatpush3.xpose.msk.msra.mxu1 %vm63_vm1, %v62_v2  ;;  %s546_s5 = scalar_lea.vmem %s419_s2, 256  ;;  %p551_p2 = scmp.lt.s32.totalorder %s419_s2, %s419_s2 }
  0x2a   :  { %459 = vmatprep.subr.mxu0 %v599_v0  ;;  %464 = vmatprep.subr.mxu1 %v599_v0  ;;  %p547_p1 = scmp.ne.s32.totalorder %s419_s2, %s546_s5  ;;  %p552_p3 = scmp.lt.s32.totalorder %s546_s5, %s546_s5 }
  0x2c   :  { %452 = vmatmul.mubr.msk.f32.vlgmr.msra.gmra.mxu0 %vm63_vm1, %v59_v3  ;;  %457 = vmatmul.mubr.msk.f32.vlgmr.msra.gmra.mxu1 %vm63_vm1, %v60_v4  ;;  %p553_p4 = por %p552_p3, %p551_p2 }
  0x2d   :  { %461 = vmatprep.mubr.msk.f32.mxu0 %vm600_vm0, %v599_v0  ;;  %466 = vmatprep.mubr.msk.f32.mxu1 %vm600_vm0, %v599_v0 }
  0x2e   :  { %460 = vmatpush3.msra.mxu0 %v251_v23  ;;  %465 = vmatpush3.msra.mxu1 %v252_v24  ;;  %p554_p5 = pnand %p553_p4, %p547_p1 }
  0xec   :  { %v136_v5 = vpop.f32.mrf.mxu0  ;;  %v212_v6 = vpop.f32.mrf.mxu1 }
  0xed   :  { %v216_v7 = vmul.f32 0.17677669, %v136_v5  ;;  %v217_v8 = vmul.f32 0.17677669, %v212_v6 }
  0xee   :  { %v453_v9 = vpop.f32.mrf.mxu0  ;;  %v458_v10 = vpop.f32.mrf.mxu1 }
  0xef   :  { %v219_v11 = vsel %vm218_vm2, %v216_v7, -inf  ;;  %v222_v12 = vsel %vm218_vm2, %v217_v8, -inf }
  0xf0   :  { %220 = vmax.xlane.f32.xlu0 %v219_v11 }
  0xf4   :  { %223 = vmax.xlane.f32.xlu0 %v222_v12 }
 0x179   :  { %v221_v13 = vpop.xlane.xlu0 %220 }
 0x17a   :  { %v225_v14 = vsub.f32 %v216_v7, %v221_v13 }
 0x17c   :  { %v227_v15 = vmul.f32 1.442695, %v225_v14 }
 0x17d   :  { %v224_v16 = vpop.xlane.xlu0 %223 }
 0x17e   :  { %478 = vpow2.f32 %v227_v15  ;;  %v226_v17 = vsub.f32 %v217_v8, %v224_v16 }
 0x180   :  { %v229_v18 = vmul.f32 1.442695, %v226_v17 }
 0x182   :  { %480 = vpow2.f32 %v229_v18 }
 0x18b   :  { %v479_v19 = vpop.eup %478 }
 0x18c   :  { %v231_v20 = vsel %vm218_vm2, %v479_v19, 0.0 }
 0x18d   :  { %232 = vadd.xlane.f32.xlu1 %v231_v20 }
 0x18f   :  { %v481_v21 = vpop.eup %480 }
 0x190   :  { %v234_v22 = vsel %vm218_vm2, %v481_v21, 0.0 }
 0x191   :  { %235 = vadd.xlane.f32.xlu1 %v234_v22 }
 0x216   :  { %v233_v25 = vpop.xlane.xlu1 %232 }
 0x217   :  { %v237_v26 = vmax.f32 %v233_v25, 1e-30 }
 0x219   :  { %482 = vrcp.f32 %v237_v26 }
 0x21a   :  { %v236_v27 = vpop.xlane.xlu1 %235 }
 0x21b   :  { %v238_v28 = vmax.f32 %v236_v27, 1e-30 }
 0x21d   :  { %484 = vrcp.f32 %v238_v28 }
 0x226   :  { %v483_v29 = vpop.eup %482 }
 0x227   :  { %v241_v30 = vmul.f32 %v483_v29, %v237_v26 }
 0x229   :  { %v243_v31 = vsub.f32 2.0, %v241_v30 }
 0x22a   :  { %v485_v32 = vpop.eup %484 }
 0x22b   :  { %v245_v33 = vmul.f32 %v483_v29, %v243_v31  ;;  %v242_v34 = vmul.f32 %v485_v32, %v238_v28 }
 0x22d   :  { %v247_v35 = vmul.f32 %v479_v19, %v245_v33  ;;  %v244_v36 = vsub.f32 2.0, %v242_v34 }
 0x22f   :  { %249 = vst.msk [vmem:[#allocation9] sm:$0xff] %vm218_vm2, %v247_v35  ;;  %v246_v37 = vmul.f32 %v485_v32, %v244_v36  ;;  %462 = vmatmul.mubr.msk.f32.vlgmr.msra.gmra.mxu0 %vm218_vm2, %v247_v35 }
 0x231   :  { %v248_v38 = vmul.f32 %v481_v21, %v246_v37 }
 0x233   :  { %250 = vst.msk [vmem:[#allocation9 + $0x8] sm:$0xff] %vm218_vm2, %v248_v38  ;;  %467 = vmatmul.mubr.msk.f32.vlgmr.msra.gmra.mxu1 %vm218_vm2, %v248_v38 }
 0x234   :  { %557 = shalt.err (!%p554_p5)
}
 0x235   :  { %424 = dma.vmem_to_hbm [thread:$0]  %s419_s2, 256, %s676_s4, [#allocation10], %s596_s20, %s596_s20, %s597_s21  }
 0x236   :  { %s602_s8 = smov [#allocation8]  }
 0x237   :  { %s406_s9 = sshll.u32 %s602_s8, 4  ;;  %s407_s9 = int_to_ptr.vmem [resolvable:$true] %s406_s9 }
 0x238   :  { %s566_s10 = scalar_lea.vmem %s407_s9, 256  ;;  %p571_p7 = scmp.lt.s32.totalorder %s407_s9, %s407_s9 }
 0x239   :  { %p567_p6 = scmp.ne.s32.totalorder %s407_s9, %s566_s10  ;;  %p572_p8 = scmp.lt.s32.totalorder %s566_s10, %s566_s10 }
 0x23b   :  { %p573_p9 = por %p572_p8, %p571_p7 }
 0x23d   :  { %p574_p10 = pnand %p573_p9, %p567_p6 }
 0x2ef   :  { %v322_v39 = vpop.f32.mrf.mxu0 }
 0x2f0   :  { %399 = vst.msk [vmem:[#allocation8] sm:$0xff] %vm63_vm1, %v322_v39 }
 0x2f1   :  { %v463_v40 = vpop.f32.mrf.mxu0 }
 0x2f3   :  { %v395_v41 = vpop.f32.mrf.mxu1 }
 0x2f4   :  { %400 = vst.msk [vmem:[#allocation8 + $0x8] sm:$0xff] %vm63_vm1, %v395_v41 }
 0x2f5   :  { %v468_v42 = vpop.f32.mrf.mxu1 }
 0x2f6   :  { %577 = shalt.err (!%p574_p10)
}
 0x2f7   :  { %412 = dma.vmem_to_hbm [thread:$0]  %s407_s9, 256, %s675_s3, [#allocation4], %s596_s20, %s596_s20, %s597_s21  }
 0x2f8   :  { %590 = dma.done.wait [#allocation4], 256  }
 0x2f9   :  { %591 = vsyncadd [#allocation4], 4294967040 }
 0x2fa   :  { %592 = dma.done.wait [#allocation10], 256  }
 0x2fb   :  { %593 = vsyncadd [#allocation10], 4294967040 }
 0x2fc   :  { %431 = vsyncpa [#allocation3], 1 }
 0x2fd   :  { %432 = vsyncpa [#allocation6], 1 }
 0x2fe   :  { %433 = vsyncpa [#allocation4], 1 }
 0x2ff   :  { %434 = vsyncpa [#allocation10], 1 }

</bundles_post_ra>
